<compile_context>
chip_gen: v6e
topology: v6e:2x2x1
jax: 0.10.0
libtpu: 0.0.40
codegen_flags: <defaults>
</compile_context>

<pallas_src>
import math

import jax
import jax.numpy as jnp
from jax.experimental import pallas as pl
from jax.experimental.pallas import tpu as pltpu


# ---------------------------------------------------------------------------
# Tuning knobs (same on all generations).
# ---------------------------------------------------------------------------
_SMALL_FAST_PATH_BYTES = 4 << 20   # below this, dispatch overhead dominates any copy
_CHUNKED_DMA_BYTES = 256 << 20     # above this, use several outstanding DMAs
_TARGET_CHUNK_BYTES = 64 << 20     # ~64 MiB per DMA chunk (HBM->HBM, no VMEM staging)
_MAX_DMA_CHUNKS = 8


def _resolve_shape(shape, numel):
    """Resolve a single -1 entry exactly like torch.Tensor.view."""
    shape = list(shape)
    neg = [i for i, s in enumerate(shape) if s == -1]
    if len(neg) > 1:
        raise ValueError("only one dimension can be inferred")
    if neg:
        known = 1
        for i, s in enumerate(shape):
            if i != neg[0]:
                known *= s
        if known == 0 or numel % known != 0:
            raise ValueError(f"shape {shape} is invalid for input of size {numel}")
        shape[neg[0]] = numel // known
    if math.prod(shape) != numel:
        raise ValueError(f"shape {shape} is invalid for input of size {numel}")
    return tuple(shape)


# ---------------------------------------------------------------------------
# Kernels (no VMEM staging anywhere: the DMA engine does all data movement).
# ---------------------------------------------------------------------------
def _alias_noop_kernel(x_hbm, o_hbm):
    # Output buffer is aliased to the input buffer (input_output_aliases={0:0}),
    # so there is nothing to do: zero HBM traffic, zero VMEM, no VLIW slots.
    # Under jit with the input donated this is a true zero-copy view; without
    # donation XLA inserts a single operand copy to honour the alias contract.
    pass  # intentionally empty


def _single_dma_copy_kernel(x_hbm, o_hbm, sem):
    # One HBM->HBM DMA of the whole array: one read + one write pass — the
    # bandwidth floor for a materialized copy on v5e / v6e / v7x.
    cp = pltpu.make_async_copy(x_hbm, o_hbm, sem)
    cp.start()
    cp.wait()


def _make_chunked_dma_copy_kernel(chunks):
    """Kernel issuing several outstanding HBM->HBM DMAs (start all, wait all).

    `chunks` is a static tuple of (start_row, n_rows) along the leading dim.
    Multiple in-flight descriptors hide per-DMA startup latency and keep the
    HBM controller saturated on multi-GiB copies.
    """
    def kernel(x_hbm, o_hbm, sems):
        copies = []
        for c, (start, rows) in enumerate(chunks):
            cp = pltpu.make_async_copy(
                x_hbm.at[pl.ds(start, rows)],
                o_hbm.at[pl.ds(start, rows)],
                sems.at[c],
            )
            cp.start()
            copies.append(cp)
        for cp in copies:
            cp.wait()
    return kernel


# ---------------------------------------------------------------------------
# Pallas-backed paths.
# ---------------------------------------------------------------------------
def _identity_via_pallas_aliased(x):
    """No-op kernel with output aliased to input: zero bytes of HBM traffic."""
    return pl.pallas_call(
        _alias_noop_kernel,
        out_shape=jax.ShapeDtypeStruct(x.shape, x.dtype),
        in_specs=[pl.BlockSpec(memory_space=pl.ANY)],   # raw HBM ref
        out_specs=pl.BlockSpec(memory_space=pl.ANY),    # same buffer (aliased)
        input_output_aliases={0: 0},
        cost_estimate=pl.CostEstimate(flops=0, transcendentals=0, bytes_accessed=0),
    )(x)


def _copy_via_pallas(x):
    """Materialized copy into a distinct output buffer via HBM->HBM DMA."""
    nbytes = x.size * x.dtype.itemsize
    ce = pl.CostEstimate(flops=0, transcendentals=0, bytes_accessed=2 * nbytes)

    n_chunks = 1
    if nbytes >= _CHUNKED_DMA_BYTES and x.ndim >= 1:
        n_chunks = int(min(_MAX_DMA_CHUNKS,
                           max(1, nbytes // _TARGET_CHUNK_BYTES),
                           x.shape[0]))

    if n_chunks <= 1:
        # Single whole-array DMA (the common case). NOTE (v7x): for mandatory
        # multi-GiB copies, sharding the stream across the 2 TensorCores
        # (grid=(2,), dimension_semantics=("parallel",)) can approach the full
        # ~3.2 TB/s chip bandwidth; at the sizes used here it is not worth the
        # extra grid machinery.
        return pl.pallas_call(
            _single_dma_copy_kernel,
            out_shape=jax.ShapeDtypeStruct(x.shape, x.dtype),
            in_specs=[pl.BlockSpec(memory_space=pl.ANY)],
            out_specs=pl.BlockSpec(memory_space=pl.ANY),
            scratch_shapes=[pltpu.SemaphoreType.DMA(())],
            cost_estimate=ce,
        )(x)

    # Static chunk boundaries along the leading dim (uneven last chunk is OK).
    rows = x.shape[0]
    per = -(-rows // n_chunks)  # ceil
    chunks = []
    start = 0
    while start < rows:
        sz = min(per, rows - start)
        chunks.append((start, sz))
        start += sz
    chunks = tuple(chunks)

    return pl.pallas_call(
        _make_chunked_dma_copy_kernel(chunks),
        out_shape=jax.ShapeDtypeStruct(x.shape, x.dtype),
        in_specs=[pl.BlockSpec(memory_space=pl.ANY)],
        out_specs=pl.BlockSpec(memory_space=pl.ANY),
        scratch_shapes=[pltpu.SemaphoreType.DMA((len(chunks),))],
        cost_estimate=ce,
    )(x)


# ---------------------------------------------------------------------------
# Public wrapper — equivalent of torch `x.view(*shape)`.
# ---------------------------------------------------------------------------
def view_pallas(x, shape, *, force_pallas=False, donate=False):
    """torch-style view.

    force_pallas: run a Pallas kernel even for tiny inputs (demo / harness).
    donate:       use the aliased no-op kernel (output buffer == input buffer);
                  zero-copy when the input is donated under jit.  Otherwise a
                  distinct output buffer is produced via a single HBM->HBM DMA
                  (chunked for very large arrays).
    """
    numel = x.size
    out_shape = _resolve_shape(shape, numel)
    nbytes = numel * x.dtype.itemsize

    if numel == 0 or (not force_pallas and nbytes < _SMALL_FAST_PATH_BYTES):
        # The real answer for a view: metadata-only reshape of a contiguous
        # array — zero bytes moved, zero custom-call dispatch overhead.
        return x.reshape(out_shape)

    out = _identity_via_pallas_aliased(x) if donate else _copy_via_pallas(x)
    # Final reshape to the requested view shape is pure metadata in JAX.
    return out.reshape(out_shape)


if __name__ == "__main__":
    key = jax.random.PRNGKey(0)
    # Shapes consistent with how `View` is used downstream of conv features:
    # NCHW input (2, 4, 16, 16) viewed as (batch, -1) -> (2, 1024).
    x = jax.random.normal(key, (2, 4, 16, 16), dtype=jnp.float32)
    target_shape = (2, -1)

    ref = x.reshape(2, -1)

    # 1) Default path at this (tiny) size: metadata-only reshape, no kernel.
    y_fast = jax.block_until_ready(view_pallas(x, target_shape))

    # 2) Forced Pallas path: single HBM->HBM DMA copy kernel (what would run
    #    for large arrays when a distinct output buffer is required).
    y_copy = jax.block_until_ready(view_pallas(x, target_shape, force_pallas=True))

    # 3) Forced Pallas path with output aliased to input: no-op kernel,
    #    zero HBM traffic when the input is donated (true view semantics).
    y_alias = jax.block_until_ready(
        view_pallas(x, target_shape, force_pallas=True, donate=True))

    for y in (y_fast, y_copy, y_alias):
        assert y.shape == ref.shape, (y.shape, ref.shape)
        assert y.dtype == ref.dtype
        assert bool(jnp.all(y == ref))

    print("KERNEL_OK")
</pallas_src>

<mosaic_0001>
module attributes {stable_mosaic.version = 11 : i64} {
  func.func @_single_dma_copy_kernel(%arg0: memref<2x4x16x16xf32, #tpu.memory_space<any>>, %arg1: memref<2x4x16x16xf32, #tpu.memory_space<any>>, %arg2: memref<!tpu.dma_semaphore, #tpu.memory_space<semaphore_mem>>) attributes {dimension_semantics = [], scalar_prefetch = 0 : i64, scratch_operands = 1 : i64, tpu.core_type = #tpu.core_type<tc>} {
    tpu.enqueue_dma source(%arg0 : memref<2x4x16x16xf32, #tpu.memory_space<any>>) target(%arg1 : memref<2x4x16x16xf32, #tpu.memory_space<any>>) target_semaphore(%arg2 : memref<!tpu.dma_semaphore, #tpu.memory_space<semaphore_mem>>)
    tpu.wait_dma2 semaphore(%arg2 : memref<!tpu.dma_semaphore, #tpu.memory_space<semaphore_mem>>) src(%arg0 : memref<2x4x16x16xf32, #tpu.memory_space<any>>) dst(%arg1 : memref<2x4x16x16xf32, #tpu.memory_space<any>>)
    return
  }
}

</mosaic_0001>

<bundles_post_ra>
// kernel: tpu_custom_call.1
= control target key start
LH: loop header
LB: loop body
LE: loop exit
PB: predicated region body
PF: predicated region fallthrough
CT: control target
= control target key end

     0   :  { %s30_s6 = smov [#allocation2]   ;;  %s31_s7 = smov 131072   ;;  %s49_s0 = inlined_call_operand.hbm [shape: f32[2,4,16,16], index: 0, kind: input, shape index: {}]   ;;  %s50_s1 = inlined_call_operand.hbm [shape: f32[2,4,16,16], index: 1, kind: output, shape index: {}]  }
   0x1   :  { %s32_s8 = smov 0  }
   0x2   :  { %12 = dma.general %s49_s0, 2048, %s50_s1, %s30_s6, %s31_s7, [#allocation4], %s32_s8, 0  }
   0x3   :  { %28 = dma.done.wait [#allocation2], 2048 }
   0x4   :  { %29 = vsyncadd [#allocation2], 4294965248 }
   0x5   :  { %18 = vsyncmov [#allocation2] }
   0x8   :  { %s19_s13 = vpop.sfrf %18 }
   0x9   :  { %p24_p0 = scmp.ne.s32.totalorder %s19_s13, 0 }
   0xb   :  { %23 = shalt.err (%p24_p0)  }

</bundles_post_ra>
